<compile_context>
chip_gen: v7x
topology: tpu7x:2x2x1
jax: 0.10.0
libtpu: 0.0.40
codegen_flags: <defaults>
</compile_context>

<pallas_src>
import jax
import jax.numpy as jnp
from jax.experimental import pallas as pl
from jax.experimental.pallas import tpu as pltpu

H1 = 128   # fc1 output width (lane-dense)
H2 = 64    # fc2 output width (kept at true width; never leaves VMEM)


def _round_up(n, m):
    return (n + m - 1) // m * m


def dqn_kernel(x_ref, w1_ref, b1_ref, w2_ref, b2_ref, w3_ref, b3_ref, out_ref):
    # In-kernel bf16 cast of x (VPU filler; keeps HBM traffic at true f32 width).
    x = x_ref[...].astype(jnp.bfloat16)
    # fc1 + ReLU: (tb, in_dim) @ (in_dim, 128), bf16 operands, f32 accumulate.
    h1 = jnp.dot(x, w1_ref[...], preferred_element_type=jnp.float32)
    h1 = jnp.maximum(h1 + b1_ref[...], 0.0).astype(jnp.bfloat16)
    # fc2 + ReLU: (tb, 128) @ (128, 64).
    h2 = jnp.dot(h1, w2_ref[...], preferred_element_type=jnp.float32)
    h2 = jnp.maximum(h2 + b2_ref[...], 0.0).astype(jnp.bfloat16)
    # fc3: (tb, 64) @ (64, out_dim); narrow (masked) store is in slack.
    out = jnp.dot(h2, w3_ref[...], preferred_element_type=jnp.float32)
    out_ref[...] = out + b3_ref[...]


def prep_params(params):
    """One-time cast of weights to bf16 / biases to f32 (kept out of the jitted
    per-call path so no pad/cast ops re-run on every forward)."""
    bf16, f32 = jnp.bfloat16, jnp.float32
    return {
        "w1": jnp.asarray(params["w1"], bf16),
        "b1": jnp.asarray(params["b1"], f32).reshape(1, -1),
        "w2": jnp.asarray(params["w2"], bf16),
        "b2": jnp.asarray(params["b2"], f32).reshape(1, -1),
        "w3": jnp.asarray(params["w3"], bf16),
        "b3": jnp.asarray(params["b3"], f32).reshape(1, -1),
    }


def dqn_forward(x, p, *, tile_b=1024, single_buffer_weights=True):
    """x: (B, input_dim) float32. p: output of prep_params (bf16 W, f32 b)."""
    B, in_dim = x.shape
    h1 = p["w1"].shape[1]
    h2 = p["w2"].shape[1]
    out_dim = p["w3"].shape[1]

    # Batch tile: sublane-aligned, capped at tile_b, and capped at ceil(B/2) so
    # the grid has >=2 steps whenever the batch allows (v7x megacore sharding).
    b_al = _round_up(B, 8)
    tb = min(tile_b, _round_up(pl.cdiv(b_al, 2), 8), b_al)
    b_p = _round_up(b_al, tb)

    x_in = x
    if b_p != B:  # only pad batch rows when strictly necessary (zero rows -> sliced off)
        x_in = jnp.zeros((b_p, in_dim), x.dtype).at[:B].set(x)

    if single_buffer_weights:
        # Grid-invariant blocks don't need double buffering.
        resident = lambda s: pl.BlockSpec(s, lambda i: (0, 0),
                                          pipeline_mode=pl.Buffered(1))
    else:
        resident = lambda s: pl.BlockSpec(s, lambda i: (0, 0))

    out = pl.pallas_call(
        dqn_kernel,
        out_shape=jax.ShapeDtypeStruct((b_p, out_dim), jnp.float32),
        grid=(b_p // tb,),
        in_specs=[
            pl.BlockSpec((tb, in_dim), lambda i: (i, 0)),   # x: true width, f32, tiled on batch
            resident((in_dim, h1)), resident((1, h1)),      # fc1 weights/bias (VMEM-resident)
            resident((h1, h2)), resident((1, h2)),          # fc2
            resident((h2, out_dim)), resident((1, out_dim)),# fc3
        ],
        out_specs=pl.BlockSpec((tb, out_dim), lambda i: (i, 0)),  # true-width writeback
        compiler_params=pltpu.CompilerParams(
            dimension_semantics=("parallel",),  # shard batch tiles across TCs (v7x)
        ),
    )(x_in, p["w1"], p["b1"], p["w2"], p["b2"], p["w3"], p["b3"])
    return out if b_p == B else out[:B]


def init_params(key, input_dim, output_dim):
    """Deterministic init matching nn.Linear's U(-1/sqrt(fan_in), 1/sqrt(fan_in))."""
    def linear(key, fan_in, fan_out):
        kw, kb = jax.random.split(key)
        bound = 1.0 / jnp.sqrt(fan_in)
        w = jax.random.uniform(kw, (fan_in, fan_out), jnp.float32, -bound, bound)
        b = jax.random.uniform(kb, (1, fan_out), jnp.float32, -bound, bound)
        return w, b

    k1, k2, k3 = jax.random.split(key, 3)
    w1, b1 = linear(k1, input_dim, H1)
    w2, b2 = linear(k2, H1, H2)
    w3, b3 = linear(k3, H2, output_dim)
    return {"w1": w1, "b1": b1, "w2": w2, "b2": b2, "w3": w3, "b3": b3}


if __name__ == "__main__":
    key = jax.random.PRNGKey(0)
    k_params, k_x, k_x_big = jax.random.split(key, 3)

    batch, input_dim, output_dim = 8, 16, 4
    params = init_params(k_params, input_dim, output_dim)
    prepped = prep_params(params)  # one-time cast, outside the jitted forward
    x = jax.random.normal(k_x, (batch, input_dim), jnp.float32)

    def make_fwd(single_buffer):
        return jax.jit(
            lambda xs, ps: dqn_forward(xs, ps, single_buffer_weights=single_buffer))

    try:
        fwd = make_fwd(True)
        out = jax.block_until_ready(fwd(x, prepped))
    except Exception:
        # Fallback for JAX builds that reject pl.Buffered(1) on grid-invariant
        # blocks; same kernel, default (double) buffering of the tiny weights.
        fwd = make_fwd(False)
        out = jax.block_until_ready(fwd(x, prepped))
    assert out.shape == (batch, output_dim)

    # Reference 1: bf16-operand / f32-accumulate math (matches kernel numerics).
    def ref_bf16(xs, p):
        c = lambda a: a.astype(jnp.bfloat16)
        h1 = jnp.maximum(
            jnp.dot(c(xs), c(p["w1"]), preferred_element_type=jnp.float32) + p["b1"], 0.0)
        h2 = jnp.maximum(
            jnp.dot(c(h1), c(p["w2"]), preferred_element_type=jnp.float32) + p["b2"], 0.0)
        return jnp.dot(c(h2), c(p["w3"]), preferred_element_type=jnp.float32) + p["b3"]

    # Reference 2: original full-f32 nn.Linear semantics (loose tol: bf16 MXU operands).
    def ref_f32(xs, p):
        h1 = jnp.maximum(xs @ p["w1"] + p["b1"], 0.0)
        h2 = jnp.maximum(h1 @ p["w2"] + p["b2"], 0.0)
        return h2 @ p["w3"] + p["b3"]

    assert jnp.allclose(out, ref_bf16(x, params), atol=2e-3, rtol=2e-3)
    assert jnp.allclose(out, ref_f32(x, params), atol=5e-2, rtol=5e-2)

    # Larger batch exercises the multi-tile grid (2 tiles of 512 rows).
    x_big = jax.random.normal(k_x_big, (1024, input_dim), jnp.float32)
    out_big = jax.block_until_ready(fwd(x_big, prepped))
    assert out_big.shape == (1024, output_dim)
    assert jnp.allclose(out_big, ref_bf16(x_big, params), atol=2e-3, rtol=2e-3)

    print("KERNEL_OK")
</pallas_src>

<mosaic_0001>
module attributes {stable_mosaic.version = 11 : i64} {
  func.func @dqn_kernel(%arg0: i32, %arg1: memref<8x16xf32, #tpu.memory_space<vmem>>, %arg2: memref<16x128xbf16, #tpu.memory_space<vmem>>, %arg3: memref<1x128xf32, #tpu.memory_space<vmem>>, %arg4: memref<128x64xbf16, #tpu.memory_space<vmem>>, %arg5: memref<1x64xf32, #tpu.memory_space<vmem>>, %arg6: memref<64x4xbf16, #tpu.memory_space<vmem>>, %arg7: memref<1x4xf32, #tpu.memory_space<vmem>>, %arg8: memref<8x4xf32, #tpu.memory_space<vmem>>) attributes {dimension_semantics = [#tpu.dimension_semantics<parallel>], iteration_bounds = array<i64: 1>, scalar_prefetch = 0 : i64, scratch_operands = 0 : i64, tpu.core_type = #tpu.core_type<tc>, window_params = [{transform_indices = @transform_0, window_bounds = array<i64: 8, 16>}, {pipeline_mode = #tpu.pipeline_mode<synchronous>, transform_indices = @transform_1, window_bounds = array<i64: 16, 128>}, {pipeline_mode = #tpu.pipeline_mode<synchronous>, transform_indices = @transform_2, window_bounds = array<i64: 1, 128>}, {pipeline_mode = #tpu.pipeline_mode<synchronous>, transform_indices = @transform_3, window_bounds = array<i64: 128, 64>}, {pipeline_mode = #tpu.pipeline_mode<synchronous>, transform_indices = @transform_4, window_bounds = array<i64: 1, 64>}, {pipeline_mode = #tpu.pipeline_mode<synchronous>, transform_indices = @transform_5, window_bounds = array<i64: 64, 4>}, {pipeline_mode = #tpu.pipeline_mode<synchronous>, transform_indices = @transform_6, window_bounds = array<i64: 1, 4>}, {transform_indices = @transform_7, window_bounds = array<i64: 8, 4>}]} {
    %c0 = arith.constant 0 : index
    %c0_0 = arith.constant 0 : index
    %0 = vector.load %arg1[%c0, %c0_0] : memref<8x16xf32, #tpu.memory_space<vmem>>, vector<8x16xf32>
    %1 = arith.truncf %0 : vector<8x16xf32> to vector<8x16xbf16>
    %c0_1 = arith.constant 0 : index
    %c0_2 = arith.constant 0 : index
    %2 = vector.load %arg2[%c0_1, %c0_2] : memref<16x128xbf16, #tpu.memory_space<vmem>>, vector<16x128xbf16>
    %cst = arith.constant dense<0.000000e+00> : vector<8x128xf32>
    %3 = tpu.matmul %1, %2, %cst {dimension_numbers = #tpu.dot_dimension_numbers<[1], [0], [0], [1], [0, 0, 1, 1], [], []>} : vector<8x16xbf16>, vector<16x128xbf16>, vector<8x128xf32> -> vector<8x128xf32>
    %c0_3 = arith.constant 0 : index
    %c0_4 = arith.constant 0 : index
    %4 = vector.load %arg3[%c0_3, %c0_4] : memref<1x128xf32, #tpu.memory_space<vmem>>, vector<1x128xf32>
    %5 = vector.broadcast %4 : vector<1x128xf32> to vector<8x128xf32>
    %6 = arith.addf %3, %5 : vector<8x128xf32>
    %cst_5 = arith.constant 0.000000e+00 : f32
    %7 = vector.broadcast %cst_5 : f32 to vector<8x128xf32>
    %8 = arith.maximumf %6, %7 : vector<8x128xf32>
    %9 = arith.truncf %8 : vector<8x128xf32> to vector<8x128xbf16>
    %c0_6 = arith.constant 0 : index
    %c0_7 = arith.constant 0 : index
    %10 = vector.load %arg4[%c0_6, %c0_7] : memref<128x64xbf16, #tpu.memory_space<vmem>>, vector<128x64xbf16>
    %cst_8 = arith.constant dense<0.000000e+00> : vector<8x64xf32>
    %11 = tpu.matmul %9, %10, %cst_8 {dimension_numbers = #tpu.dot_dimension_numbers<[1], [0], [0], [1], [0, 0, 1, 1], [], []>} : vector<8x128xbf16>, vector<128x64xbf16>, vector<8x64xf32> -> vector<8x64xf32>
    %c0_9 = arith.constant 0 : index
    %c0_10 = arith.constant 0 : index
    %12 = vector.load %arg5[%c0_9, %c0_10] : memref<1x64xf32, #tpu.memory_space<vmem>>, vector<1x64xf32>
    %13 = vector.broadcast %12 : vector<1x64xf32> to vector<8x64xf32>
    %14 = arith.addf %11, %13 : vector<8x64xf32>
    %cst_11 = arith.constant 0.000000e+00 : f32
    %15 = vector.broadcast %cst_11 : f32 to vector<8x64xf32>
    %16 = arith.maximumf %14, %15 : vector<8x64xf32>
    %17 = arith.truncf %16 : vector<8x64xf32> to vector<8x64xbf16>
    %c0_12 = arith.constant 0 : index
    %c0_13 = arith.constant 0 : index
    %18 = vector.load %arg6[%c0_12, %c0_13] : memref<64x4xbf16, #tpu.memory_space<vmem>>, vector<64x4xbf16>
    %cst_14 = arith.constant dense<0.000000e+00> : vector<8x4xf32>
    %19 = tpu.matmul %17, %18, %cst_14 {dimension_numbers = #tpu.dot_dimension_numbers<[1], [0], [0], [1], [0, 0, 1, 1], [], []>} : vector<8x64xbf16>, vector<64x4xbf16>, vector<8x4xf32> -> vector<8x4xf32>
    %c0_15 = arith.constant 0 : index
    %c0_16 = arith.constant 0 : index
    %20 = vector.load %arg7[%c0_15, %c0_16] : memref<1x4xf32, #tpu.memory_space<vmem>>, vector<1x4xf32>
    %21 = vector.broadcast %20 : vector<1x4xf32> to vector<8x4xf32>
    %22 = arith.addf %19, %21 : vector<8x4xf32>
    %c0_17 = arith.constant 0 : index
    %c0_18 = arith.constant 0 : index
    %23 = vector.load %arg8[%c0_17, %c0_18] : memref<8x4xf32, #tpu.memory_space<vmem>>, vector<8x4xf32>
    tpu.vector_store %arg8[%c0_17, %c0_18], %22 {strides = array<i32>} : memref<8x4xf32, #tpu.memory_space<vmem>>, vector<8x4xf32>,
    return
  }
  func.func @transform_0(%arg0: i32) -> (i32, i32) {
    %c0_i32 = arith.constant 0 : i32
    %c0_i32_0 = arith.constant 0 : i32
    return %arg0, %c0_i32 : i32, i32
  }
  func.func @transform_1(%arg0: i32) -> (i32, i32) {
    %c0_i32 = arith.constant 0 : i32
    %c0_i32_0 = arith.constant 0 : i32
    %c0_i32_1 = arith.constant 0 : i32
    return %c0_i32, %c0_i32_0 : i32, i32
  }
  func.func @transform_2(%arg0: i32) -> (i32, i32) {
    %c0_i32 = arith.constant 0 : i32
    %c0_i32_0 = arith.constant 0 : i32
    %c0_i32_1 = arith.constant 0 : i32
    return %c0_i32, %c0_i32_0 : i32, i32
  }
  func.func @transform_3(%arg0: i32) -> (i32, i32) {
    %c0_i32 = arith.constant 0 : i32
    %c0_i32_0 = arith.constant 0 : i32
    %c0_i32_1 = arith.constant 0 : i32
    return %c0_i32, %c0_i32_0 : i32, i32
  }
  func.func @transform_4(%arg0: i32) -> (i32, i32) {
    %c0_i32 = arith.constant 0 : i32
    %c0_i32_0 = arith.constant 0 : i32
    %c0_i32_1 = arith.constant 0 : i32
    return %c0_i32, %c0_i32_0 : i32, i32
  }
  func.func @transform_5(%arg0: i32) -> (i32, i32) {
    %c0_i32 = arith.constant 0 : i32
    %c0_i32_0 = arith.constant 0 : i32
    %c0_i32_1 = arith.constant 0 : i32
    return %c0_i32, %c0_i32_0 : i32, i32
  }
  func.func @transform_6(%arg0: i32) -> (i32, i32) {
    %c0_i32 = arith.constant 0 : i32
    %c0_i32_0 = arith.constant 0 : i32
    %c0_i32_1 = arith.constant 0 : i32
    return %c0_i32, %c0_i32_0 : i32, i32
  }
  func.func @transform_7(%arg0: i32) -> (i32, i32) {
    %c0_i32 = arith.constant 0 : i32
    %c0_i32_0 = arith.constant 0 : i32
    return %arg0, %c0_i32 : i32, i32
  }
}

module attributes {stable_mosaic.version = 11 : i64} {
  func.func @dqn_kernel(%arg0: i32, %arg1: memref<8x16xf32, #tpu.memory_space<vmem>>, %arg2: memref<16x128xbf16, #tpu.memory_space<vmem>>, %arg3: memref<1x128xf32, #tpu.memory_space<vmem>>, %arg4: memref<128x64xbf16, #tpu.memory_space<vmem>>, %arg5: memref<1x64xf32, #tpu.memory_space<vmem>>, %arg6: memref<64x4xbf16, #tpu.memory_space<vmem>>, %arg7: memref<1x4xf32, #tpu.memory_space<vmem>>, %arg8: memref<8x4xf32, #tpu.memory_space<vmem>>) attributes {dimension_semantics = [#tpu.dimension_semantics<parallel>], iteration_bounds = array<i64: 1>, scalar_prefetch = 0 : i64, scratch_operands = 0 : i64, tpu.core_type = #tpu.core_type<tc>, window_params = [{transform_indices = @transform_0, window_bounds = array<i64: 8, 16>}, {pipeline_mode = #tpu.pipeline_mode<synchronous>, transform_indices = @transform_1, window_bounds = array<i64: 16, 128>}, {pipeline_mode = #tpu.pipeline_mode<synchronous>, transform_indices = @transform_2, window_bounds = array<i64: 1, 128>}, {pipeline_mode = #tpu.pipeline_mode<synchronous>, transform_indices = @transform_3, window_bounds = array<i64: 128, 64>}, {pipeline_mode = #tpu.pipeline_mode<synchronous>, transform_indices = @transform_4, window_bounds = array<i64: 1, 64>}, {pipeline_mode = #tpu.pipeline_mode<synchronous>, transform_indices = @transform_5, window_bounds = array<i64: 64, 4>}, {pipeline_mode = #tpu.pipeline_mode<synchronous>, transform_indices = @transform_6, window_bounds = array<i64: 1, 4>}, {transform_indices = @transform_7, window_bounds = array<i64: 8, 4>}]} {
    %c0 = arith.constant 0 : index
    %c0_0 = arith.constant 0 : index
    %0 = vector.load %arg1[%c0, %c0_0] : memref<8x16xf32, #tpu.memory_space<vmem>>, vector<8x16xf32>
    %1 = arith.truncf %0 : vector<8x16xf32> to vector<8x16xbf16>
    %c0_1 = arith.constant 0 : index
    %c0_2 = arith.constant 0 : index
    %2 = vector.load %arg2[%c0_1, %c0_2] : memref<16x128xbf16, #tpu.memory_space<vmem>>, vector<16x128xbf16>
    %cst = arith.constant dense<0.000000e+00> : vector<8x128xf32>
    %3 = tpu.matmul %1, %2, %cst {dimension_numbers = #tpu.dot_dimension_numbers<[1], [0], [0], [1], [0, 0, 1, 1], [], []>} : vector<8x16xbf16>, vector<16x128xbf16>, vector<8x128xf32> -> vector<8x128xf32>
    %c0_3 = arith.constant 0 : index
    %c0_4 = arith.constant 0 : index
    %4 = vector.load %arg3[%c0_3, %c0_4] : memref<1x128xf32, #tpu.memory_space<vmem>>, vector<1x128xf32>
    %5 = vector.broadcast %4 : vector<1x128xf32> to vector<8x128xf32>
    %6 = arith.addf %3, %5 : vector<8x128xf32>
    %cst_5 = arith.constant 0.000000e+00 : f32
    %7 = vector.broadcast %cst_5 : f32 to vector<8x128xf32>
    %8 = arith.maximumf %6, %7 : vector<8x128xf32>
    %9 = arith.truncf %8 : vector<8x128xf32> to vector<8x128xbf16>
    %c0_6 = arith.constant 0 : index
    %c0_7 = arith.constant 0 : index
    %10 = vector.load %arg4[%c0_6, %c0_7] : memref<128x64xbf16, #tpu.memory_space<vmem>>, vector<128x64xbf16>
    %cst_8 = arith.constant dense<0.000000e+00> : vector<8x64xf32>
    %11 = tpu.matmul %9, %10, %cst_8 {dimension_numbers = #tpu.dot_dimension_numbers<[1], [0], [0], [1], [0, 0, 1, 1], [], []>} : vector<8x128xbf16>, vector<128x64xbf16>, vector<8x64xf32> -> vector<8x64xf32>
    %c0_9 = arith.constant 0 : index
    %c0_10 = arith.constant 0 : index
    %12 = vector.load %arg5[%c0_9, %c0_10] : memref<1x64xf32, #tpu.memory_space<vmem>>, vector<1x64xf32>
    %13 = vector.broadcast %12 : vector<1x64xf32> to vector<8x64xf32>
    %14 = arith.addf %11, %13 : vector<8x64xf32>
    %cst_11 = arith.constant 0.000000e+00 : f32
    %15 = vector.broadcast %cst_11 : f32 to vector<8x64xf32>
    %16 = arith.maximumf %14, %15 : vector<8x64xf32>
    %17 = arith.truncf %16 : vector<8x64xf32> to vector<8x64xbf16>
    %c0_12 = arith.constant 0 : index
    %c0_13 = arith.constant 0 : index
    %18 = vector.load %arg6[%c0_12, %c0_13] : memref<64x4xbf16, #tpu.memory_space<vmem>>, vector<64x4xbf16>
    %cst_14 = arith.constant dense<0.000000e+00> : vector<8x4xf32>
    %19 = tpu.matmul %17, %18, %cst_14 {dimension_numbers = #tpu.dot_dimension_numbers<[1], [0], [0], [1], [0, 0, 1, 1], [], []>} : vector<8x64xbf16>, vector<64x4xbf16>, vector<8x4xf32> -> vector<8x4xf32>
    %c0_15 = arith.constant 0 : index
    %c0_16 = arith.constant 0 : index
    %20 = vector.load %arg7[%c0_15, %c0_16] : memref<1x4xf32, #tpu.memory_space<vmem>>, vector<1x4xf32>
    %21 = vector.broadcast %20 : vector<1x4xf32> to vector<8x4xf32>
    %22 = arith.addf %19, %21 : vector<8x4xf32>
    %c0_17 = arith.constant 0 : index
    %c0_18 = arith.constant 0 : index
    %23 = vector.load %arg8[%c0_17, %c0_18] : memref<8x4xf32, #tpu.memory_space<vmem>>, vector<8x4xf32>
    tpu.vector_store %arg8[%c0_17, %c0_18], %22 {strides = array<i32>} : memref<8x4xf32, #tpu.memory_space<vmem>>, vector<8x4xf32>,
    return
  }
  func.func @transform_0(%arg0: i32) -> (i32, i32) {
    %c0_i32 = arith.constant 0 : i32
    %c0_i32_0 = arith.constant 0 : i32
    return %arg0, %c0_i32 : i32, i32
  }
  func.func @transform_1(%arg0: i32) -> (i32, i32) {
    %c0_i32 = arith.constant 0 : i32
    %c0_i32_0 = arith.constant 0 : i32
    %c0_i32_1 = arith.constant 0 : i32
    return %c0_i32, %c0_i32_0 : i32, i32
  }
  func.func @transform_2(%arg0: i32) -> (i32, i32) {
    %c0_i32 = arith.constant 0 : i32
    %c0_i32_0 = arith.constant 0 : i32
    %c0_i32_1 = arith.constant 0 : i32
    return %c0_i32, %c0_i32_0 : i32, i32
  }
  func.func @transform_3(%arg0: i32) -> (i32, i32) {
    %c0_i32 = arith.constant 0 : i32
    %c0_i32_0 = arith.constant 0 : i32
    %c0_i32_1 = arith.constant 0 : i32
    return %c0_i32, %c0_i32_0 : i32, i32
  }
  func.func @transform_4(%arg0: i32) -> (i32, i32) {
    %c0_i32 = arith.constant 0 : i32
    %c0_i32_0 = arith.constant 0 : i32
    %c0_i32_1 = arith.constant 0 : i32
    return %c0_i32, %c0_i32_0 : i32, i32
  }
  func.func @transform_5(%arg0: i32) -> (i32, i32) {
    %c0_i32 = arith.constant 0 : i32
    %c0_i32_0 = arith.constant 0 : i32
    %c0_i32_1 = arith.constant 0 : i32
    return %c0_i32, %c0_i32_0 : i32, i32
  }
  func.func @transform_6(%arg0: i32) -> (i32, i32) {
    %c0_i32 = arith.constant 0 : i32
    %c0_i32_0 = arith.constant 0 : i32
    %c0_i32_1 = arith.constant 0 : i32
    return %c0_i32, %c0_i32_0 : i32, i32
  }
  func.func @transform_7(%arg0: i32) -> (i32, i32) {
    %c0_i32 = arith.constant 0 : i32
    %c0_i32_0 = arith.constant 0 : i32
    return %arg0, %c0_i32 : i32, i32
  }
}

</mosaic_0001>

<bundles_post_ra>
// kernel: _lambda_.1
= control target key start
LH: loop header
LB: loop body
LE: loop exit
PB: predicated region body
PF: predicated region fallthrough
CT: control target
= control target key end

     0   :  { %v379_v0 = vmov 0.0   ;;  %vm380_vm0 = vmmov 0   ;;  %vm44_vm1 = vcmask 130048   ;;  %vm242_vm2 = vcmask 523264   ;;  %s475_s1 = inlined_call_operand.vmem [shape: bf16[16,128], index: 1, kind: input, shape index: {}]   ;;  %s476_s0 = inlined_call_operand.vmem [shape: f32[8,16], index: 0, kind: input, shape index: {}]   ;;  %s477_s3 = inlined_call_operand.vmem [shape: bf16[128,64], index: 3, kind: input, shape index: {}]   ;;  %s478_s5 = inlined_call_operand.vmem [shape: bf16[64,4], index: 5, kind: input, shape index: {}]   ;;  %s479_s2 = inlined_call_operand.vmem [shape: f32[1,128], index: 2, kind: input, shape index: {}]   ;;  %s480_s4 = inlined_call_operand.vmem [shape: f32[1,64], index: 4, kind: input, shape index: {}]   ;;  %s481_s6 = inlined_call_operand.vmem [shape: f32[1,4], index: 6, kind: input, shape index: {}]   ;;  %s482_s7 = inlined_call_operand.vmem [shape: f32[8,4], index: 7, kind: output, shape index: {}]  }
   0x1   :  { %326 = vmatprep.subr.bf16.mxu0 %v379_v0  ;;  %v366_v1 = vld [vmem:[%s475_s1] sm:$0xff]   ;;  %328 = vmatprep.mubr.msk.bf16.mxu0 %vm380_vm0, %v379_v0  ;;  %v368_v5 = vld [vmem:[%s477_s3 + $0x8] sm:$0xff]   ;;  %v369_v6 = vld [vmem:[%s477_s3 + $0x10] sm:$0xff]   ;;  %vm286_vm3 = vcmask 31744  }
   0x2   :  { %v27_v2 = vld [vmem:[%s476_s0] sm:$0xff]  ;;  %332 = vmatprep.subr.bf16.mxu1 %v379_v0  ;;  %348 = vmatprep.mubr.msk.bf16.mxu1 %vm380_vm0, %v379_v0  ;;  %v370_v7 = vld [vmem:[%s477_s3 + $0x18] sm:$0xff]   ;;  %v372_v9 = vld [vmem:[%s477_s3 + $0x28] sm:$0xff]  }
   0x3   :  { %327 = vmatpush3.bf16.msra.mxu0 %v366_v1  ;;  %v28_v3 = vpack.c.bf16 %v27_v2, %v27_v2  ;;  %v367_v4 = vld [vmem:[%s477_s3] sm:$0xff]   ;;  %v373_v10 = vld [vmem:[%s477_s3 + $0x30] sm:$0xff]   ;;  %v374_v11 = vld [vmem:[%s477_s3 + $0x38] sm:$0xff]  }
   0x4   :  { %352 = vmatprep.subr.bf16.mxu0 %v379_v0  ;;  %333 = vmatpush3.bf16.msra.mxu1 %v367_v4  ;;  %v371_v8 = vld [vmem:[%s477_s3 + $0x20] sm:$0xff]   ;;  %v376_v13 = vld [vmem:[%s478_s5 + $0x8] sm:$0xff]   ;;  %v377_v22 = vld [vmem:[%s478_s5 + $0x10] sm:$0xff]  }
   0x5   :  { %334 = vmatprep.subr.bf16.mxu1 %v379_v0  ;;  %v375_v12 = vld [vmem:[%s478_s5] sm:$0xff]   ;;  %v378_v23 = vld [vmem:[%s478_s5 + $0x18] sm:$0xff]  }
   0x6   :  { %329 = vmatmul.mubr.msk.bf16.vlgmr.msra.gmra.mrb[0].mxu0 %vm44_vm1, %v28_v3  ;;  %v292_v14 = vld [vmem:[%s479_s2] ss:$0 sm:$0xff] }
   0x7   :  { %360 = vmatprep.mubr.msk.bf16.mxu0 %vm380_vm0, %v379_v0  ;;  %353 = vmatpush3.bf16.msra.mxu0 %v375_v12  ;;  %v295_v24 = vld [vmem:[%s480_s4] ss:$0 sm:$0xff] }
   0x8   :  { %335 = vmatpush3.bf16.msra.mxu1 %v368_v5  ;;  %354 = vmatprep.subr.bf16.mxu0 %v379_v0  ;;  %v304_v32 = vld [vmem:[%s481_s6] ss:$0 sm:$0xff] }
   0x9   :  { %336 = vmatprep.subr.bf16.mxu1 %v379_v0 }
   0xb   :  { %355 = vmatpush3.bf16.msra.mxu0 %v376_v13 }
   0xc   :  { %337 = vmatpush3.bf16.msra.mxu1 %v369_v6  ;;  %356 = vmatprep.subr.bf16.mxu0 %v379_v0 }
   0xd   :  { %338 = vmatprep.subr.bf16.mxu1 %v379_v0 }
   0xf   :  { %357 = vmatpush3.bf16.msra.mxu0 %v377_v22 }
  0x10   :  { %339 = vmatpush3.bf16.msra.mxu1 %v370_v7  ;;  %358 = vmatprep.subr.bf16.mxu0 %v379_v0 }
  0x11   :  { %340 = vmatprep.subr.bf16.mxu1 %v379_v0 }
  0x13   :  { %359 = vmatpush3.bf16.msra.mxu0 %v378_v23 }
  0x14   :  { %341 = vmatpush3.bf16.msra.mxu1 %v371_v8 }
  0x15   :  { %342 = vmatprep.subr.bf16.mxu1 %v379_v0 }
  0x18   :  { %343 = vmatpush3.bf16.msra.mxu1 %v372_v9 }
  0x19   :  { %344 = vmatprep.subr.bf16.mxu1 %v379_v0 }
  0x1c   :  { %345 = vmatpush3.bf16.msra.mxu1 %v373_v10 }
  0x1d   :  { %346 = vmatprep.subr.bf16.mxu1 %v379_v0 }
  0x20   :  { %347 = vmatpush3.bf16.msra.mxu1 %v374_v11 }
  0xd9   :  { %v82_v15 = vpop.f32.mrb[0].mxu0 }
  0xda   :  { %v83_v16 = vadd.f32 %v292_v14, %v82_v15  ;;  %v330_v17 = vpop.f32.mrb[1].mxu0 }
  0xdb   :  { %v85_v18 = vpop.f32.mrb[2].mxu0 }
  0xdc   :  { %v88_v19 = vmax.f32 %v83_v16, 0.0  ;;  %v331_v20 = vpop.f32.mrb[3].mxu0 }
  0xde   :  { %v89_v21 = vpack.c.bf16 %v88_v19, %v88_v19 }
  0xe0   :  { %349 = vmatmul.mubr.bf16.vlgmr.msra.gmra.mrb[0].mxu1 %v89_v21 }
 0x1b3   :  { %v195_v25 = vpop.f32.mrb[0].mxu1 }
 0x1b4   :  { %v196_v26 = vadd.f32 %v295_v24, %v195_v25  ;;  %v350_v27 = vpop.f32.mrb[1].mxu1 }
 0x1b5   :  { %v198_v28 = vpop.f32.mrb[2].mxu1 }
 0x1b6   :  { %v201_v29 = vmax.f32 %v196_v26, 0.0  ;;  %v351_v30 = vpop.f32.mrb[3].mxu1 }
 0x1b8   :  { %v202_v31 = vpack.c.bf16 %v201_v29, %v201_v29 }
 0x1ba   :  { %361 = vmatmul.mubr.msk.bf16.vlgmr.msra.gmra.mrb[4].mxu0 %vm242_vm2, %v202_v31 }
 0x28d   :  { %v280_v33 = vpop.f32.mrb[4].mxu0 }
 0x28e   :  { %v281_v34 = vadd.f32 %v304_v32, %v280_v33  ;;  %v362_v35 = vpop.f32.mrb[5].mxu0 }
 0x28f   :  { %v283_v36 = vpop.f32.mrb[6].mxu0 }
 0x290   :  { %287 = vst.msk [vmem:[%s482_s7] sm:$0xff] %vm286_vm3, %v281_v34  ;;  %v363_v37 = vpop.f32.mrb[7].mxu0 }

// kernel: _lambda_.1
= control target key start
LH: loop header
LB: loop body
LE: loop exit
PB: predicated region body
PF: predicated region fallthrough
CT: control target
= control target key end

     0   :  { %v379_v0 = vmov 0.0   ;;  %vm380_vm0 = vmmov 0   ;;  %vm44_vm1 = vcmask 130048   ;;  %vm242_vm2 = vcmask 523264   ;;  %s475_s1 = inlined_call_operand.vmem [shape: bf16[16,128], index: 1, kind: input, shape index: {}]   ;;  %s476_s0 = inlined_call_operand.vmem [shape: f32[8,16], index: 0, kind: input, shape index: {}]   ;;  %s477_s3 = inlined_call_operand.vmem [shape: bf16[128,64], index: 3, kind: input, shape index: {}]   ;;  %s478_s5 = inlined_call_operand.vmem [shape: bf16[64,4], index: 5, kind: input, shape index: {}]   ;;  %s479_s2 = inlined_call_operand.vmem [shape: f32[1,128], index: 2, kind: input, shape index: {}]   ;;  %s480_s4 = inlined_call_operand.vmem [shape: f32[1,64], index: 4, kind: input, shape index: {}]   ;;  %s481_s6 = inlined_call_operand.vmem [shape: f32[1,4], index: 6, kind: input, shape index: {}]   ;;  %s482_s7 = inlined_call_operand.vmem [shape: f32[8,4], index: 7, kind: output, shape index: {}]  }
   0x1   :  { %326 = vmatprep.subr.bf16.mxu0 %v379_v0  ;;  %v366_v1 = vld [vmem:[%s475_s1] sm:$0xff]   ;;  %328 = vmatprep.mubr.msk.bf16.mxu0 %vm380_vm0, %v379_v0  ;;  %v368_v5 = vld [vmem:[%s477_s3 + $0x8] sm:$0xff]   ;;  %v369_v6 = vld [vmem:[%s477_s3 + $0x10] sm:$0xff]   ;;  %vm286_vm3 = vcmask 31744  }
   0x2   :  { %v27_v2 = vld [vmem:[%s476_s0] sm:$0xff]  ;;  %332 = vmatprep.subr.bf16.mxu1 %v379_v0  ;;  %348 = vmatprep.mubr.msk.bf16.mxu1 %vm380_vm0, %v379_v0  ;;  %v370_v7 = vld [vmem:[%s477_s3 + $0x18] sm:$0xff]   ;;  %v372_v9 = vld [vmem:[%s477_s3 + $0x28] sm:$0xff]  }
   0x3   :  { %327 = vmatpush3.bf16.msra.mxu0 %v366_v1  ;;  %v28_v3 = vpack.c.bf16 %v27_v2, %v27_v2  ;;  %v367_v4 = vld [vmem:[%s477_s3] sm:$0xff]   ;;  %v373_v10 = vld [vmem:[%s477_s3 + $0x30] sm:$0xff]   ;;  %v374_v11 = vld [vmem:[%s477_s3 + $0x38] sm:$0xff]  }
   0x4   :  { %352 = vmatprep.subr.bf16.mxu0 %v379_v0  ;;  %333 = vmatpush3.bf16.msra.mxu1 %v367_v4  ;;  %v371_v8 = vld [vmem:[%s477_s3 + $0x20] sm:$0xff]   ;;  %v376_v13 = vld [vmem:[%s478_s5 + $0x8] sm:$0xff]   ;;  %v377_v22 = vld [vmem:[%s478_s5 + $0x10] sm:$0xff]  }
   0x5   :  { %334 = vmatprep.subr.bf16.mxu1 %v379_v0  ;;  %v375_v12 = vld [vmem:[%s478_s5] sm:$0xff]   ;;  %v378_v23 = vld [vmem:[%s478_s5 + $0x18] sm:$0xff]  }
   0x6   :  { %329 = vmatmul.mubr.msk.bf16.vlgmr.msra.gmra.mrb[0].mxu0 %vm44_vm1, %v28_v3  ;;  %v292_v14 = vld [vmem:[%s479_s2] ss:$0 sm:$0xff] }
   0x7   :  { %360 = vmatprep.mubr.msk.bf16.mxu0 %vm380_vm0, %v379_v0  ;;  %353 = vmatpush3.bf16.msra.mxu0 %v375_v12  ;;  %v295_v24 = vld [vmem:[%s480_s4] ss:$0 sm:$0xff] }
   0x8   :  { %335 = vmatpush3.bf16.msra.mxu1 %v368_v5  ;;  %354 = vmatprep.subr.bf16.mxu0 %v379_v0  ;;  %v304_v32 = vld [vmem:[%s481_s6] ss:$0 sm:$0xff] }
   0x9   :  { %336 = vmatprep.subr.bf16.mxu1 %v379_v0 }
   0xb   :  { %355 = vmatpush3.bf16.msra.mxu0 %v376_v13 }
   0xc   :  { %337 = vmatpush3.bf16.msra.mxu1 %v369_v6  ;;  %356 = vmatprep.subr.bf16.mxu0 %v379_v0 }
   0xd   :  { %338 = vmatprep.subr.bf16.mxu1 %v379_v0 }
   0xf   :  { %357 = vmatpush3.bf16.msra.mxu0 %v377_v22 }
  0x10   :  { %339 = vmatpush3.bf16.msra.mxu1 %v370_v7  ;;  %358 = vmatprep.subr.bf16.mxu0 %v379_v0 }
  0x11   :  { %340 = vmatprep.subr.bf16.mxu1 %v379_v0 }
  0x13   :  { %359 = vmatpush3.bf16.msra.mxu0 %v378_v23 }
  0x14   :  { %341 = vmatpush3.bf16.msra.mxu1 %v371_v8 }
  0x15   :  { %342 = vmatprep.subr.bf16.mxu1 %v379_v0 }
  0x18   :  { %343 = vmatpush3.bf16.msra.mxu1 %v372_v9 }
  0x19   :  { %344 = vmatprep.subr.bf16.mxu1 %v379_v0 }
  0x1c   :  { %345 = vmatpush3.bf16.msra.mxu1 %v373_v10 }
  0x1d   :  { %346 = vmatprep.subr.bf16.mxu1 %v379_v0 }
  0x20   :  { %347 = vmatpush3.bf16.msra.mxu1 %v374_v11 }
  0xd9   :  { %v82_v15 = vpop.f32.mrb[0].mxu0 }
  0xda   :  { %v83_v16 = vadd.f32 %v292_v14, %v82_v15  ;;  %v330_v17 = vpop.f32.mrb[1].mxu0 }
  0xdb   :  { %v85_v18 = vpop.f32.mrb[2].mxu0 }
  0xdc   :  { %v88_v19 = vmax.f32 %v83_v16, 0.0  ;;  %v331_v20 = vpop.f32.mrb[3].mxu0 }
  0xde   :  { %v89_v21 = vpack.c.bf16 %v88_v19, %v88_v19 }
  0xe0   :  { %349 = vmatmul.mubr.bf16.vlgmr.msra.gmra.mrb[0].mxu1 %v89_v21 }
 0x1b3   :  { %v195_v25 = vpop.f32.mrb[0].mxu1 }
 0x1b4   :  { %v196_v26 = vadd.f32 %v295_v24, %v195_v25  ;;  %v350_v27 = vpop.f32.mrb[1].mxu1 }
 0x1b5   :  { %v198_v28 = vpop.f32.mrb[2].mxu1 }
 0x1b6   :  { %v201_v29 = vmax.f32 %v196_v26, 0.0  ;;  %v351_v30 = vpop.f32.mrb[3].mxu1 }
 0x1b8   :  { %v202_v31 = vpack.c.bf16 %v201_v29, %v201_v29 }
 0x1ba   :  { %361 = vmatmul.mubr.msk.bf16.vlgmr.msra.gmra.mrb[4].mxu0 %vm242_vm2, %v202_v31 }
 0x28d   :  { %v280_v33 = vpop.f32.mrb[4].mxu0 }
 0x28e   :  { %v281_v34 = vadd.f32 %v304_v32, %v280_v33  ;;  %v362_v35 = vpop.f32.mrb[5].mxu0 }
 0x28f   :  { %v283_v36 = vpop.f32.mrb[6].mxu0 }
 0x290   :  { %287 = vst.msk [vmem:[%s482_s7] sm:$0xff] %vm286_vm3, %v281_v34  ;;  %v363_v37 = vpop.f32.mrb[7].mxu0 }

</bundles_post_ra>
